<compile_context>
chip_gen: v6e
topology: v6e:2x2x1
jax: 0.10.0
libtpu: 0.0.40
codegen_flags: <defaults>
</compile_context>

<pallas_src>
import functools

import jax
import jax.numpy as jnp
from jax import lax
from jax.experimental import pallas as pl
from jax.experimental.pallas import tpu as pltpu


_ACTIVATIONS = {
    None: lambda h: h,
    "tanh": jnp.tanh,
    "relu": jax.nn.relu,
    "sigmoid": jax.nn.sigmoid,
}


def _round_up(n, m):
    return ((n + m - 1) // m) * m


def _rnn_kernel(x_ref, w1_ref, bh_ref, w2t_ref, w3t_ref, y_ref,
                h_carry_ref, xc_ref, h_all_ref, *,
                f_hidden, chunk, batch_p, hidden_p, unroll):
    """One time-chunk per grid step.

    x_ref:       (chunk*batch_p, 1)        raw input column for this chunk (time-major rows)
    w1_ref:      (1, hidden_p)             W1[:, 0] (input_size == 1)
    bh_ref:      (1, hidden_p)             b_h
    w2t_ref:     (hidden_p, hidden_p)      W2^T (zero-padded)
    w3t_ref:     (hidden_p, out_p)         W3^T (zero-padded, f32 or bf16)
    y_ref:       (chunk*batch_p, out_p)    output block (lane-dense)
    h_carry_ref: (batch_p, hidden_p) f32   hidden state carried across chunks
    xc_ref:      (chunk*batch_p, hidden_p) per-chunk input drive scratch
    h_all_ref:   (chunk*batch_p, hidden_p) per-chunk hidden states for projection
    """
    act = _ACTIVATIONS[f_hidden]

    # Initialize the hidden-state carry on the first time-chunk only.
    @pl.when(pl.program_id(0) == 0)
    def _():
        h_carry_ref[...] = jnp.zeros_like(h_carry_ref)

    # Per-chunk input drive: (R,1) * (1,H) + (1,H) -> (R,H).
    # One vectorized broadcast-FMA, off the recurrence critical path.
    xc_ref[...] = x_ref[...] * w1_ref[...] + bh_ref[...]

    # Hold W2^T in vregs only while it fits comfortably (<=128x128 f32);
    # otherwise stream it from VMEM inside the dot to avoid spills in the loop.
    w2t = w2t_ref[...] if hidden_p <= 128 else None

    def step(t, h_prev):
        row = pl.multiple_of(t * batch_p, batch_p)           # sublane-aligned
        xc_t = xc_ref[pl.ds(row, batch_p), :]                 # (batch_p, hidden_p)
        rhs = w2t if w2t is not None else w2t_ref[...]
        h_new = act(xc_t + jnp.dot(h_prev, rhs,
                                   preferred_element_type=jnp.float32))
        h_all_ref[pl.ds(row, batch_p), :] = h_new.astype(h_all_ref.dtype)
        return h_new

    # Modest unroll: lets the LLO scheduler overlap next-step loads with the
    # current W2 matmul drain without blowing up IMEM for long chunks.
    h_last = lax.fori_loop(0, chunk, step, h_carry_ref[...], unroll=unroll)
    h_carry_ref[...] = h_last

    # Per-chunk output projection: one big lane-dense MXU matmul.
    y_ref[...] = jnp.dot(h_all_ref[...], w3t_ref[...],
                         preferred_element_type=jnp.float32).astype(y_ref.dtype)


def custom_rnn_forward(x, W1, W2, W3, b_h, f_hidden=None, *,
                       chunk_steps=None, use_bf16_proj=False):
    """x: (batch, seq) float32.  Returns (batch, seq, output_size)."""
    batch, seq = x.shape
    hidden_size, input_size = W1.shape
    output_size = W3.shape[0]
    # torch .t() on a (batch, 1) chunk only works for 2-D x => input_size == 1
    assert input_size == 1

    f32 = jnp.float32
    proj_dtype = jnp.bfloat16 if use_bf16_proj else f32

    batch_p = _round_up(batch, 8)
    hidden_p = _round_up(hidden_size, 128)
    out_p = _round_up(output_size, 128)

    # Time-chunk size: multiple of 8 steps, capped so the per-chunk VMEM
    # working set stays small (O(chunk*batch_p*hidden_p)).
    if chunk_steps is None:
        chunk_steps = min(128, _round_up(seq, 8))
    chunk = max(8, _round_up(chunk_steps, 8))
    seq_p = _round_up(seq, chunk)
    num_chunks = seq_p // chunk
    rows = chunk * batch_p

    # Time-major x, zero-padded (padding only at the END of time, so it cannot
    # affect real timesteps), flattened to a scalar column.  HBM footprint is
    # seq_p*batch_p*4 bytes: the (.., hidden) drive slab never hits HBM.
    x_tm = jnp.zeros((seq_p, batch_p), f32).at[:seq, :batch].set(x.T.astype(f32))
    x_col = x_tm.reshape(seq_p * batch_p, 1)

    w1_row = jnp.zeros((1, hidden_p), f32).at[0, :hidden_size].set(W1[:, 0].astype(f32))
    bh_row = jnp.zeros((1, hidden_p), f32).at[0, :hidden_size].set(b_h.astype(f32))
    # Zero-padded weight rows/cols are a correctness invariant (see header).
    w2t_p = jnp.zeros((hidden_p, hidden_p), f32).at[:hidden_size, :hidden_size].set(
        W2.T.astype(f32))
    w3t_p = jnp.zeros((hidden_p, out_p), proj_dtype).at[:hidden_size, :output_size].set(
        W3.T.astype(proj_dtype))

    kernel = functools.partial(_rnn_kernel, f_hidden=f_hidden, chunk=chunk,
                               batch_p=batch_p, hidden_p=hidden_p, unroll=8)

    y_flat = pl.pallas_call(
        kernel,
        out_shape=jax.ShapeDtypeStruct((seq_p * batch_p, out_p), f32),
        grid_spec=pltpu.PrefetchScalarGridSpec(
            num_scalar_prefetch=0,
            grid=(num_chunks,),
            in_specs=[
                pl.BlockSpec((rows, 1), lambda c: (c, 0)),             # x column chunk
                pl.BlockSpec((1, hidden_p), lambda c: (0, 0)),         # W1[:, 0]
                pl.BlockSpec((1, hidden_p), lambda c: (0, 0)),         # b_h
                pl.BlockSpec((hidden_p, hidden_p), lambda c: (0, 0)),  # W2^T
                pl.BlockSpec((hidden_p, out_p), lambda c: (0, 0)),     # W3^T
            ],
            out_specs=pl.BlockSpec((rows, out_p), lambda c: (c, 0)),   # y chunk (lane-dense)
            scratch_shapes=[
                pltpu.VMEM((batch_p, hidden_p), f32),        # h carry across chunks
                pltpu.VMEM((rows, hidden_p), f32),           # per-chunk input drive
                pltpu.VMEM((rows, hidden_p), proj_dtype),    # per-chunk hidden states
            ],
        ),
        compiler_params=pltpu.CompilerParams(
            # Hidden state carries across chunks -> the grid axis is sequential.
            dimension_semantics=("arbitrary",),
            # Below v7x's 64 MiB physical VMEM; far above this kernel's needs.
            vmem_limit_bytes=48 * 1024 * 1024,
        ),
    )(x_col, w1_row, bh_row, w2t_p, w3t_p)

    # Rows are globally time-major: slice away padding -> (batch, seq, out).
    y = y_flat.reshape(seq_p, batch_p, out_p)[:seq, :batch, :output_size]
    return jnp.transpose(y, (1, 0, 2))


def _reference_forward(x, W1, W2, W3, b_h, f_hidden=None):
    """Pure-JAX reference mirroring the PyTorch loop exactly."""
    batch, seq = x.shape
    hidden = W1.shape[0]
    act = _ACTIVATIONS[f_hidden]
    h = jnp.zeros((batch, hidden), jnp.float32)
    ys = []
    for t in range(seq):
        xi = x[:, t:t + 1]                                   # (batch, 1)
        h = (W2 @ h.T + W1 @ xi.T).T + b_h
        h = act(h)
        ys.append((W3 @ h.T).T)
    return jnp.stack(ys, axis=1)


if __name__ == "__main__":
    # Small shapes consistent with the module: input_size=1 (2-D x), hidden=32.
    batch, seq = 2, 8
    input_size, hidden_size, output_size = 1, 32, 4
    W_scale = 0.1

    key = jax.random.PRNGKey(0)
    k1, k2, k3, kx, kx2 = jax.random.split(key, 5)

    W1 = (jax.random.uniform(k1, (hidden_size, input_size)) - 0.5) * W_scale
    W2 = (jax.random.uniform(k2, (hidden_size, hidden_size)) - 0.5) * W_scale
    W3 = (jax.random.uniform(k3, (output_size, hidden_size)) - 0.5) * W_scale
    b_h = jnp.zeros((hidden_size,), jnp.float32)

    x = jax.random.normal(kx, (batch, seq), jnp.float32)

    # Default config (f_hidden=None), f32 projection.
    out = jax.block_until_ready(custom_rnn_forward(x, W1, W2, W3, b_h, f_hidden=None))
    ref = _reference_forward(x, W1, W2, W3, b_h, f_hidden=None)
    assert out.shape == (batch, seq, output_size)
    assert jnp.allclose(out, ref, atol=1e-5, rtol=1e-5)

    # Optional hidden non-linearity path (f_hidden="tanh").
    out_t = jax.block_until_ready(custom_rnn_forward(x, W1, W2, W3, b_h, f_hidden="tanh"))
    ref_t = _reference_forward(x, W1, W2, W3, b_h, f_hidden="tanh")
    assert jnp.allclose(out_t, ref_t, atol=1e-4, rtol=1e-4)

    # Multi-chunk path: seq=20 with 8-step chunks -> 3 chunks; the hidden state
    # carries across chunks via VMEM scratch and trailing padding is sliced off.
    seq2 = 20
    x2 = jax.random.normal(kx2, (batch, seq2), jnp.float32)
    out_c = jax.block_until_ready(
        custom_rnn_forward(x2, W1, W2, W3, b_h, f_hidden="tanh", chunk_steps=8))
    ref_c = _reference_forward(x2, W1, W2, W3, b_h, f_hidden="tanh")
    assert out_c.shape == (batch, seq2, output_size)
    assert jnp.allclose(out_c, ref_c, atol=1e-4, rtol=1e-4)

    # bf16 projection path (h_all / W3^T in bf16, f32 accumulate): looser tol.
    out_bf = jax.block_until_ready(
        custom_rnn_forward(x, W1, W2, W3, b_h, f_hidden=None, use_bf16_proj=True))
    assert jnp.allclose(out_bf, ref, atol=2e-2, rtol=2e-2)

    print("KERNEL_OK")
</pallas_src>

<mosaic_0001>
module attributes {stable_mosaic.version = 11 : i64} {
  func.func @_rnn_kernel(%arg0: i32, %arg1: memref<64x1xf32, #tpu.memory_space<vmem>>, %arg2: memref<1x128xf32, #tpu.memory_space<vmem>>, %arg3: memref<1x128xf32, #tpu.memory_space<vmem>>, %arg4: memref<128x128xf32, #tpu.memory_space<vmem>>, %arg5: memref<128x128xf32, #tpu.memory_space<vmem>>, %arg6: memref<64x128xf32, #tpu.memory_space<vmem>>, %arg7: memref<8x128xf32, #tpu.memory_space<vmem>>, %arg8: memref<64x128xf32, #tpu.memory_space<vmem>>, %arg9: memref<64x128xf32, #tpu.memory_space<vmem>>) attributes {dimension_semantics = [#tpu.dimension_semantics<arbitrary>], iteration_bounds = array<i64: 1>, scalar_prefetch = 0 : i64, scratch_operands = 3 : i64, tpu.core_type = #tpu.core_type<tc>, window_params = [{transform_indices = @transform_0, window_bounds = array<i64: 64, 1>}, {pipeline_mode = #tpu.pipeline_mode<synchronous>, transform_indices = @transform_1, window_bounds = array<i64: 1, 128>}, {pipeline_mode = #tpu.pipeline_mode<synchronous>, transform_indices = @transform_2, window_bounds = array<i64: 1, 128>}, {pipeline_mode = #tpu.pipeline_mode<synchronous>, transform_indices = @transform_3, window_bounds = array<i64: 128, 128>}, {pipeline_mode = #tpu.pipeline_mode<synchronous>, transform_indices = @transform_4, window_bounds = array<i64: 128, 128>}, {transform_indices = @transform_5, window_bounds = array<i64: 64, 128>}]} {
    %c0_i32 = arith.constant 0 : i32
    %0 = arith.cmpi eq, %arg0, %c0_i32 : i32
    %1 = arith.extui %0 : i1 to i32
    %c0_i32_0 = arith.constant 0 : i32
    %2 = arith.cmpi ne, %1, %c0_i32_0 : i32
    scf.if %2 {
      %cst_53 = arith.constant 0.000000e+00 : f32
      %83 = vector.broadcast %cst_53 : f32 to vector<8x128xf32>
      %c0_54 = arith.constant 0 : index
      %c0_55 = arith.constant 0 : index
      %84 = vector.load %arg7[%c0_54, %c0_55] : memref<8x128xf32, #tpu.memory_space<vmem>>, vector<8x128xf32>
      tpu.vector_store %arg7[%c0_54, %c0_55], %83 {strides = array<i32>} : memref<8x128xf32, #tpu.memory_space<vmem>>, vector<8x128xf32>,
    } else {
    }
    %c0 = arith.constant 0 : index
    %c0_1 = arith.constant 0 : index
    %3 = vector.load %arg1[%c0, %c0_1] : memref<64x1xf32, #tpu.memory_space<vmem>>, vector<64x1xf32>
    %c0_2 = arith.constant 0 : index
    %c0_3 = arith.constant 0 : index
    %4 = vector.load %arg2[%c0_2, %c0_3] : memref<1x128xf32, #tpu.memory_space<vmem>>, vector<1x128xf32>
    %5 = vector.broadcast %3 : vector<64x1xf32> to vector<64x128xf32>
    %6 = vector.broadcast %4 : vector<1x128xf32> to vector<64x128xf32>
    %7 = arith.mulf %5, %6 : vector<64x128xf32>
    %c0_4 = arith.constant 0 : index
    %c0_5 = arith.constant 0 : index
    %8 = vector.load %arg3[%c0_4, %c0_5] : memref<1x128xf32, #tpu.memory_space<vmem>>, vector<1x128xf32>
    %9 = vector.broadcast %8 : vector<1x128xf32> to vector<64x128xf32>
    %10 = arith.addf %7, %9 : vector<64x128xf32>
    %c0_6 = arith.constant 0 : index
    %c0_7 = arith.constant 0 : index
    %11 = vector.load %arg8[%c0_6, %c0_7] : memref<64x128xf32, #tpu.memory_space<vmem>>, vector<64x128xf32>
    tpu.vector_store %arg8[%c0_6, %c0_7], %10 {strides = array<i32>} : memref<64x128xf32, #tpu.memory_space<vmem>>, vector<64x128xf32>,
    %c0_8 = arith.constant 0 : index
    %c0_9 = arith.constant 0 : index
    %12 = vector.load %arg4[%c0_8, %c0_9] : memref<128x128xf32, #tpu.memory_space<vmem>>, vector<128x128xf32>
    %c0_10 = arith.constant 0 : index
    %c0_11 = arith.constant 0 : index
    %13 = vector.load %arg7[%c0_10, %c0_11] : memref<8x128xf32, #tpu.memory_space<vmem>>, vector<8x128xf32>
    %c0_i32_12 = arith.constant 0 : i32
    %c8_i32 = arith.constant 8 : i32
    %14 = arith.muli %c0_i32_12, %c8_i32 : i32
    %15 = tpu.assume_multiple %14, 8 : i32
    %16 = arith.index_cast %15 : i32 to index
    %c0_13 = arith.constant 0 : index
    %17 = vector.load %arg8[%16, %c0_13] : memref<64x128xf32, #tpu.memory_space<vmem>>, vector<8x128xf32>
    %cst = arith.constant dense<0.000000e+00> : vector<8x128xf32>
    %18 = tpu.matmul %13, %12, %cst {dimension_numbers = #tpu.dot_dimension_numbers<[1], [0], [0], [1], [0, 0, 1, 1], [], []>} : vector<8x128xf32>, vector<128x128xf32>, vector<8x128xf32> -> vector<8x128xf32>
    %19 = arith.addf %17, %18 : vector<8x128xf32>
    %20 = arith.index_cast %15 : i32 to index
    %c0_14 = arith.constant 0 : index
    %21 = vector.load %arg9[%20, %c0_14] : memref<64x128xf32, #tpu.memory_space<vmem>>, vector<8x128xf32>
    tpu.vector_store %arg9[%20, %c0_14], %19 {strides = array<i32>} : memref<64x128xf32, #tpu.memory_space<vmem>>, vector<8x128xf32>,
    %c1_i32 = arith.constant 1 : i32
    %c8_i32_15 = arith.constant 8 : i32
    %22 = arith.muli %c1_i32, %c8_i32_15 : i32
    %23 = tpu.assume_multiple %22, 8 : i32
    %24 = arith.index_cast %23 : i32 to index
    %c0_16 = arith.constant 0 : index
    %25 = vector.load %arg8[%24, %c0_16] : memref<64x128xf32, #tpu.memory_space<vmem>>, vector<8x128xf32>
    %cst_17 = arith.constant dense<0.000000e+00> : vector<8x128xf32>
    %26 = tpu.matmul %19, %12, %cst_17 {dimension_numbers = #tpu.dot_dimension_numbers<[1], [0], [0], [1], [0, 0, 1, 1], [], []>} : vector<8x128xf32>, vector<128x128xf32>, vector<8x128xf32> -> vector<8x128xf32>
    %27 = arith.addf %25, %26 : vector<8x128xf32>
    %28 = arith.index_cast %23 : i32 to index
    %c0_18 = arith.constant 0 : index
    %29 = vector.load %arg9[%28, %c0_18] : memref<64x128xf32, #tpu.memory_space<vmem>>, vector<8x128xf32>
    tpu.vector_store %arg9[%28, %c0_18], %27 {strides = array<i32>} : memref<64x128xf32, #tpu.memory_space<vmem>>, vector<8x128xf32>,
    %c2_i32 = arith.constant 2 : i32
    %c8_i32_19 = arith.constant 8 : i32
    %30 = arith.muli %c2_i32, %c8_i32_19 : i32
    %31 = tpu.assume_multiple %30, 8 : i32
    %32 = arith.index_cast %31 : i32 to index
    %c0_20 = arith.constant 0 : index
    %33 = vector.load %arg8[%32, %c0_20] : memref<64x128xf32, #tpu.memory_space<vmem>>, vector<8x128xf32>
    %cst_21 = arith.constant dense<0.000000e+00> : vector<8x128xf32>
    %34 = tpu.matmul %27, %12, %cst_21 {dimension_numbers = #tpu.dot_dimension_numbers<[1], [0], [0], [1], [0, 0, 1, 1], [], []>} : vector<8x128xf32>, vector<128x128xf32>, vector<8x128xf32> -> vector<8x128xf32>
    %35 = arith.addf %33, %34 : vector<8x128xf32>
    %36 = arith.index_cast %31 : i32 to index
    %c0_22 = arith.constant 0 : index
    %37 = vector.load %arg9[%36, %c0_22] : memref<64x128xf32, #tpu.memory_space<vmem>>, vector<8x128xf32>
    tpu.vector_store %arg9[%36, %c0_22], %35 {strides = array<i32>} : memref<64x128xf32, #tpu.memory_space<vmem>>, vector<8x128xf32>,
    %c3_i32 = arith.constant 3 : i32
    %c8_i32_23 = arith.constant 8 : i32
    %38 = arith.muli %c3_i32, %c8_i32_23 : i32
    %39 = tpu.assume_multiple %38, 8 : i32
    %40 = arith.index_cast %39 : i32 to index
    %c0_24 = arith.constant 0 : index
    %41 = vector.load %arg8[%40, %c0_24] : memref<64x128xf32, #tpu.memory_space<vmem>>, vector<8x128xf32>
    %cst_25 = arith.constant dense<0.000000e+00> : vector<8x128xf32>
    %42 = tpu.matmul %35, %12, %cst_25 {dimension_numbers = #tpu.dot_dimension_numbers<[1], [0], [0], [1], [0, 0, 1, 1], [], []>} : vector<8x128xf32>, vector<128x128xf32>, vector<8x128xf32> -> vector<8x128xf32>
    %43 = arith.addf %41, %42 : vector<8x128xf32>
    %44 = arith.index_cast %39 : i32 to index
    %c0_26 = arith.constant 0 : index
    %45 = vector.load %arg9[%44, %c0_26] : memref<64x128xf32, #tpu.memory_space<vmem>>, vector<8x128xf32>
    tpu.vector_store %arg9[%44, %c0_26], %43 {strides = array<i32>} : memref<64x128xf32, #tpu.memory_space<vmem>>, vector<8x128xf32>,
    %c4_i32 = arith.constant 4 : i32
    %c8_i32_27 = arith.constant 8 : i32
    %46 = arith.muli %c4_i32, %c8_i32_27 : i32
    %47 = tpu.assume_multiple %46, 8 : i32
    %48 = arith.index_cast %47 : i32 to index
    %c0_28 = arith.constant 0 : index
    %49 = vector.load %arg8[%48, %c0_28] : memref<64x128xf32, #tpu.memory_space<vmem>>, vector<8x128xf32>
    %cst_29 = arith.constant dense<0.000000e+00> : vector<8x128xf32>
    %50 = tpu.matmul %43, %12, %cst_29 {dimension_numbers = #tpu.dot_dimension_numbers<[1], [0], [0], [1], [0, 0, 1, 1], [], []>} : vector<8x128xf32>, vector<128x128xf32>, vector<8x128xf32> -> vector<8x128xf32>
    %51 = arith.addf %49, %50 : vector<8x128xf32>
    %52 = arith.index_cast %47 : i32 to index
    %c0_30 = arith.constant 0 : index
    %53 = vector.load %arg9[%52, %c0_30] : memref<64x128xf32, #tpu.memory_space<vmem>>, vector<8x128xf32>
    tpu.vector_store %arg9[%52, %c0_30], %51 {strides = array<i32>} : memref<64x128xf32, #tpu.memory_space<vmem>>, vector<8x128xf32>,
    %c5_i32 = arith.constant 5 : i32
    %c8_i32_31 = arith.constant 8 : i32
    %54 = arith.muli %c5_i32, %c8_i32_31 : i32
    %55 = tpu.assume_multiple %54, 8 : i32
    %56 = arith.index_cast %55 : i32 to index
    %c0_32 = arith.constant 0 : index
    %57 = vector.load %arg8[%56, %c0_32] : memref<64x128xf32, #tpu.memory_space<vmem>>, vector<8x128xf32>
    %cst_33 = arith.constant dense<0.000000e+00> : vector<8x128xf32>
    %58 = tpu.matmul %51, %12, %cst_33 {dimension_numbers = #tpu.dot_dimension_numbers<[1], [0], [0], [1], [0, 0, 1, 1], [], []>} : vector<8x128xf32>, vector<128x128xf32>, vector<8x128xf32> -> vector<8x128xf32>
    %59 = arith.addf %57, %58 : vector<8x128xf32>
    %60 = arith.index_cast %55 : i32 to index
    %c0_34 = arith.constant 0 : index
    %61 = vector.load %arg9[%60, %c0_34] : memref<64x128xf32, #tpu.memory_space<vmem>>, vector<8x128xf32>
    tpu.vector_store %arg9[%60, %c0_34], %59 {strides = array<i32>} : memref<64x128xf32, #tpu.memory_space<vmem>>, vector<8x128xf32>,
    %c6_i32 = arith.constant 6 : i32
    %c8_i32_35 = arith.constant 8 : i32
    %62 = arith.muli %c6_i32, %c8_i32_35 : i32
    %63 = tpu.assume_multiple %62, 8 : i32
    %64 = arith.index_cast %63 : i32 to index
    %c0_36 = arith.constant 0 : index
    %65 = vector.load %arg8[%64, %c0_36] : memref<64x128xf32, #tpu.memory_space<vmem>>, vector<8x128xf32>
    %cst_37 = arith.constant dense<0.000000e+00> : vector<8x128xf32>
    %66 = tpu.matmul %59, %12, %cst_37 {dimension_numbers = #tpu.dot_dimension_numbers<[1], [0], [0], [1], [0, 0, 1, 1], [], []>} : vector<8x128xf32>, vector<128x128xf32>, vector<8x128xf32> -> vector<8x128xf32>
    %67 = arith.addf %65, %66 : vector<8x128xf32>
    %68 = arith.index_cast %63 : i32 to index
    %c0_38 = arith.constant 0 : index
    %69 = vector.load %arg9[%68, %c0_38] : memref<64x128xf32, #tpu.memory_space<vmem>>, vector<8x128xf32>
    tpu.vector_store %arg9[%68, %c0_38], %67 {strides = array<i32>} : memref<64x128xf32, #tpu.memory_space<vmem>>, vector<8x128xf32>,
    %c7_i32 = arith.constant 7 : i32
    %c8_i32_39 = arith.constant 8 : i32
    %70 = arith.muli %c7_i32, %c8_i32_39 : i32
    %71 = tpu.assume_multiple %70, 8 : i32
    %72 = arith.index_cast %71 : i32 to index
    %c0_40 = arith.constant 0 : index
    %73 = vector.load %arg8[%72, %c0_40] : memref<64x128xf32, #tpu.memory_space<vmem>>, vector<8x128xf32>
    %cst_41 = arith.constant dense<0.000000e+00> : vector<8x128xf32>
    %74 = tpu.matmul %67, %12, %cst_41 {dimension_numbers = #tpu.dot_dimension_numbers<[1], [0], [0], [1], [0, 0, 1, 1], [], []>} : vector<8x128xf32>, vector<128x128xf32>, vector<8x128xf32> -> vector<8x128xf32>
    %75 = arith.addf %73, %74 : vector<8x128xf32>
    %76 = arith.index_cast %71 : i32 to index
    %c0_42 = arith.constant 0 : index
    %77 = vector.load %arg9[%76, %c0_42] : memref<64x128xf32, #tpu.memory_space<vmem>>, vector<8x128xf32>
    tpu.vector_store %arg9[%76, %c0_42], %75 {strides = array<i32>} : memref<64x128xf32, #tpu.memory_space<vmem>>, vector<8x128xf32>,
    %c8_i32_43 = arith.constant 8 : i32
    %c0_44 = arith.constant 0 : index
    %c0_45 = arith.constant 0 : index
    %78 = vector.load %arg7[%c0_44, %c0_45] : memref<8x128xf32, #tpu.memory_space<vmem>>, vector<8x128xf32>
    tpu.vector_store %arg7[%c0_44, %c0_45], %75 {strides = array<i32>} : memref<8x128xf32, #tpu.memory_space<vmem>>, vector<8x128xf32>,
    %c0_46 = arith.constant 0 : index
    %c0_47 = arith.constant 0 : index
    %79 = vector.load %arg9[%c0_46, %c0_47] : memref<64x128xf32, #tpu.memory_space<vmem>>, vector<64x128xf32>
    %c0_48 = arith.constant 0 : index
    %c0_49 = arith.constant 0 : index
    %80 = vector.load %arg5[%c0_48, %c0_49] : memref<128x128xf32, #tpu.memory_space<vmem>>, vector<128x128xf32>
    %cst_50 = arith.constant dense<0.000000e+00> : vector<64x128xf32>
    %81 = tpu.matmul %79, %80, %cst_50 {dimension_numbers = #tpu.dot_dimension_numbers<[1], [0], [0], [1], [0, 0, 1, 1], [], []>} : vector<64x128xf32>, vector<128x128xf32>, vector<64x128xf32> -> vector<64x128xf32>
    %c0_51 = arith.constant 0 : index
    %c0_52 = arith.constant 0 : index
    %82 = vector.load %arg6[%c0_51, %c0_52] : memref<64x128xf32, #tpu.memory_space<vmem>>, vector<64x128xf32>
    tpu.vector_store %arg6[%c0_51, %c0_52], %81 {strides = array<i32>} : memref<64x128xf32, #tpu.memory_space<vmem>>, vector<64x128xf32>,
    return
  }
  func.func @transform_0(%arg0: i32) -> (i32, i32) {
    %c0_i32 = arith.constant 0 : i32
    %c0_i32_0 = arith.constant 0 : i32
    return %arg0, %c0_i32 : i32, i32
  }
  func.func @transform_1(%arg0: i32) -> (i32, i32) {
    %c0_i32 = arith.constant 0 : i32
    %c0_i32_0 = arith.constant 0 : i32
    %c0_i32_1 = arith.constant 0 : i32
    return %c0_i32, %c0_i32_0 : i32, i32
  }
  func.func @transform_2(%arg0: i32) -> (i32, i32) {
    %c0_i32 = arith.constant 0 : i32
    %c0_i32_0 = arith.constant 0 : i32
    %c0_i32_1 = arith.constant 0 : i32
    return %c0_i32, %c0_i32_0 : i32, i32
  }
  func.func @transform_3(%arg0: i32) -> (i32, i32) {
    %c0_i32 = arith.constant 0 : i32
    %c0_i32_0 = arith.constant 0 : i32
    %c0_i32_1 = arith.constant 0 : i32
    return %c0_i32, %c0_i32_0 : i32, i32
  }
  func.func @transform_4(%arg0: i32) -> (i32, i32) {
    %c0_i32 = arith.constant 0 : i32
    %c0_i32_0 = arith.constant 0 : i32
    %c0_i32_1 = arith.constant 0 : i32
    return %c0_i32, %c0_i32_0 : i32, i32
  }
  func.func @transform_5(%arg0: i32) -> (i32, i32) {
    %c0_i32 = arith.constant 0 : i32
    %c0_i32_0 = arith.constant 0 : i32
    return %arg0, %c0_i32 : i32, i32
  }
}

</mosaic_0001>

<bundles_post_ra>
// kernel: tpu_custom_call.1
= control target key start
LH: loop header
LB: loop body
LE: loop exit
PB: predicated region body
PF: predicated region fallthrough
CT: control target
= control target key end

     0   :  { %10 = vsyncpa [#allocation6], 0  ;;  %s1904_s0 = inlined_call_operand.vmem [shape: f32[64,1], index: 0, kind: input, shape index: {}]   ;;  %s1905_s1 = inlined_call_operand.vmem [shape: f32[1,128], index: 1, kind: input, shape index: {}]   ;;  %s1906_s2 = inlined_call_operand.vmem [shape: f32[1,128], index: 2, kind: input, shape index: {}]   ;;  %s1907_s3 = inlined_call_operand.hbm [shape: f32[128,128], index: 3, kind: input, shape index: {}]   ;;  %s1908_s4 = inlined_call_operand.hbm [shape: f32[128,128], index: 4, kind: input, shape index: {}]   ;;  %s1909_s5 = inlined_call_operand.hbm [shape: f32[64,128], index: 5, kind: output, shape index: {}]  }
   0x1   :  { %11 = vsyncpa [#allocation9], 0 }
   0x2   :  { %12 = vsyncpa [#allocation7], 0  ;;  %s1473_s18 = smov [#allocation5]  }
   0x3   :  { %s24_s19 = sshll.u32 %s1473_s18, 4  ;;  %s25_s19 = int_to_ptr.vmem [resolvable:$true] %s24_s19 }
   0x4   :  { %s1415_s20 = scalar_lea.vmem %s25_s19, 2048  ;;  %p1420_p1 = scmp.lt.s32.totalorder %s25_s19, %s25_s19 }
   0x5   :  { %p1416_p0 = scmp.ne.s32.totalorder %s25_s19, %s1415_s20  ;;  %p1421_p2 = scmp.lt.s32.totalorder %s1415_s20, %s1415_s20 }
   0x7   :  { %p1422_p3 = por %p1421_p2, %p1420_p1 }
   0x9   :  { %p1423_p4 = pnand %p1422_p3, %p1416_p0 }
   0xb   :  { %1426 = shalt.err (!%p1423_p4)
}
   0xc   :  { %s1474_s21 = smov 128   ;;  %s1475_s22 = smov 8  }
   0xd   :  { %30 = dma.hbm_to_vmem [thread:$0]  %s1907_s3, 2048, %s25_s19, [#allocation6], %s1474_s21, %s1474_s21, %s1475_s22  }
   0xe   :  { %s1476_s25 = smov [#allocation8]  }
   0xf   :  { %s36_s26 = sshll.u32 %s1476_s25, 4  ;;  %s37_s26 = int_to_ptr.vmem [resolvable:$true] %s36_s26 }
  0x10   :  { %s1435_s27 = scalar_lea.vmem %s37_s26, 2048  ;;  %p1440_p6 = scmp.lt.s32.totalorder %s37_s26, %s37_s26 }
  0x11   :  { %p1436_p5 = scmp.ne.s32.totalorder %s37_s26, %s1435_s27  ;;  %p1441_p7 = scmp.lt.s32.totalorder %s1435_s27, %s1435_s27 }
  0x13   :  { %p1442_p8 = por %p1441_p7, %p1440_p6 }
  0x15   :  { %p1443_p9 = pnand %p1442_p8, %p1436_p5 }
  0x17   :  { %1446 = shalt.err (!%p1443_p9)
}
  0x18   :  { %42 = dma.hbm_to_vmem [thread:$0]  %s1908_s4, 2048, %s37_s26, [#allocation9], %s1474_s21, %s1474_s21, %s1475_s22  }
  0x19   :  { %1467 = dma.done.wait [#allocation6], 2048  }
  0x1a   :  { %1468 = vsyncadd [#allocation6], 4294965248 }
  0x1b   :  { %1469 = dma.done.wait [#allocation9], 2048  }
  0x1c   :  { %1470 = vsyncadd [#allocation9], 4294965248  ;;  %v1477_v0 = vmov 0.0   ;;  %vm1478_vm0 = vmmov 0   ;;  %v1479_v1 = vmov 0   ;;  %v1529_v2 = vld [vmem:[#allocation5 + $0x78] sm:$0xff] }
  0x1d   :  { %1073 = vmatprep.subr.mxu1 %v1477_v0  ;;  %1105 = vmatprep.mubr.msk.f32.mxu1 %vm1478_vm0, %v1477_v0  ;;  %v1531_v3 = vld [vmem:[#allocation5 + $0x70] sm:$0xff]  ;;  %v1536_v4 = vld [vmem:[#allocation5 + $0x68] sm:$0xff]  ;;  %v1542_v5 = vld [vmem:[#allocation5 + $0x60] sm:$0xff] }
  0x1e   :  { %1405 = vset.pattern.permute.xlu0 %v1479_v1  ;;  %1143 = vmatprep.subr.mxu0 %v1477_v0  ;;  %v54_v6 = vld [vmem:[%s1904_s0] sm:$0xff]  ;;  %v1551_v7 = vld [vmem:[#allocation5 + $0x58] sm:$0xff]  ;;  %v55_v8 = vld [vmem:[%s1904_s0 + $0x8] sm:$0xff] }
  0x1f   :  { %1175 = vmatprep.mubr.msk.f32.mxu0 %vm1478_vm0, %v1477_v0  ;;  %1406 = vset.pattern.permute.xlu1 %v1479_v1  ;;  %v1559_v9 = vld [vmem:[#allocation5 + $0x50] sm:$0xff]  ;;  %v1565_v10 = vld [vmem:[#allocation5 + $0x48] sm:$0xff]  ;;  %v58_v11 = vld [vmem:[%s1904_s0 + $0x20] sm:$0xff] }
  0x20   :  { %1074 = vmatpush3.msra.mxu1 %v1529_v2  ;;  %1144 = vmatpush3.msra.mxu0 %v1529_v2  ;;  %v1573_v12 = vld [vmem:[#allocation5 + $0x40] sm:$0xff]  ;;  %v1579_v13 = vld [vmem:[#allocation5 + $0x38] sm:$0xff]  ;;  %v60_v14 = vld [vmem:[%s1904_s0 + $0x30] sm:$0xff] }
  0x21   :  { %1075 = vmatprep.subr.mxu1 %v1477_v0  ;;  %1145 = vmatprep.subr.mxu0 %v1477_v0  ;;  %v1587_v15 = vld [vmem:[#allocation5 + $0x30] sm:$0xff]  ;;  %v1593_v16 = vld [vmem:[#allocation5 + $0x28] sm:$0xff]  ;;  %v1598_v17 = vld [vmem:[#allocation5 + $0x20] sm:$0xff] }
  0x22   :  { %1076 = vmatpush3.msra.mxu1 %v1531_v3  ;;  %1146 = vmatpush3.msra.mxu0 %v1531_v3  ;;  %v1604_v18 = vld [vmem:[#allocation5 + $0x18] sm:$0xff]  ;;  %v1610_v19 = vld [vmem:[#allocation5 + $0x10] sm:$0xff]  ;;  %v1616_v20 = vld [vmem:[#allocation5 + $0x8] sm:$0xff] }
  0x23   :  { %1077 = vmatprep.subr.mxu1 %v1477_v0  ;;  %1147 = vmatprep.subr.mxu0 %v1477_v0  ;;  %v1622_v21 = vld [vmem:[#allocation5] sm:$0xff]  ;;  %v56_v30 = vld [vmem:[%s1904_s0 + $0x10] sm:$0xff]  ;;  %v57_v31 = vld [vmem:[%s1904_s0 + $0x18] sm:$0xff] }
  0x24   :  { %1078 = vmatpush3.msra.mxu1 %v1536_v4  ;;  %1148 = vmatpush3.msra.mxu0 %v1536_v4  ;;  %v1675_v22 = vld [vmem:[%s1905_s1] ss:$0 sm:$0xff]  ;;  %v59_v32 = vld [vmem:[%s1904_s0 + $0x28] sm:$0xff]  ;;  %v61_v33 = vld [vmem:[%s1904_s0 + $0x38] sm:$0xff]  ;;  %s1480_s0 = smov [#allocation10]  }
  0x25   :  { %1079 = vmatprep.subr.mxu1 %v1477_v0  ;;  %65 = vperm.xlu0 %1405, %v54_v6   ;;  %v1681_v25 = vld [vmem:[%s1906_s2] ss:$0 sm:$0xff]  ;;  %v779_v58 = vld [vmem:[#allocation8 + $0x78] sm:$0xff]  ;;  %v773_v6 = vld [vmem:[#allocation8 + $0x48] sm:$0xff]  ;;  %s898_s23 = sshll.u32 %s1480_s0, 4  ;;  %s899_s23 = int_to_ptr.vmem [resolvable:$true] %s898_s23 }
  0x26   :  { %1080 = vmatpush3.msra.mxu1 %v1542_v5  ;;  %1149 = vmatprep.subr.mxu0 %v1477_v0  ;;  %s1447_s24 = scalar_lea.vmem %s899_s23, 1024  ;;  %p1452_p11 = scmp.lt.s32.totalorder %s899_s23, %s899_s23 }
  0x27   :  { %1081 = vmatprep.subr.mxu1 %v1477_v0  ;;  %1150 = vmatpush3.msra.mxu0 %v1542_v5  ;;  %p1448_p10 = scmp.ne.s32.totalorder %s899_s23, %s1447_s24  ;;  %p1453_p12 = scmp.lt.s32.totalorder %s1447_s24, %s1447_s24 }
  0x28   :  { %1082 = vmatpush3.msra.mxu1 %v1551_v7  ;;  %1151 = vmatprep.subr.mxu0 %v1477_v0 }
  0x29   :  { %1083 = vmatprep.subr.mxu1 %v1477_v0  ;;  %70 = vperm.xlu0 %1405, %v55_v8   ;;  %v771_v8 = vld [vmem:[#allocation8 + $0x38] sm:$0xff]  ;;  %p1454_p13 = por %p1453_p12, %p1452_p11 }
  0x2a   :  { %1084 = vmatpush3.msra.mxu1 %v1559_v9  ;;  %1152 = vmatpush3.msra.mxu0 %v1551_v7 }
  0x2b   :  { %1085 = vmatprep.subr.mxu1 %v1477_v0  ;;  %1153 = vmatprep.subr.mxu0 %v1477_v0  ;;  %p1455_p0 = pnand %p1454_p13, %p1448_p10 }
  0x2c   :  { %1086 = vmatpush3.msra.mxu1 %v1565_v10  ;;  %1154 = vmatpush3.msra.mxu0 %v1559_v9 }
  0x2d   :  { %1087 = vmatprep.subr.mxu1 %v1477_v0  ;;  %85 = vperm.xlu0 %1405, %v58_v11   ;;  %v768_v11 = vld [vmem:[#allocation8 + $0x20] sm:$0xff] }
  0x2e   :  { %1088 = vmatpush3.msra.mxu1 %v1573_v12  ;;  %1155 = vmatprep.subr.mxu0 %v1477_v0 }
  0x2f   :  { %1089 = vmatprep.subr.mxu1 %v1477_v0  ;;  %1156 = vmatpush3.msra.mxu0 %v1565_v10 }
  0x30   :  { %1090 = vmatpush3.msra.mxu1 %v1579_v13  ;;  %1157 = vmatprep.subr.mxu0 %v1477_v0 }
  0x31   :  { %1091 = vmatprep.subr.mxu1 %v1477_v0  ;;  %95 = vperm.xlu0 %1405, %v60_v14   ;;  %v765_v14 = vld [vmem:[#allocation8 + $0x8] sm:$0xff] }
  0x32   :  { %1092 = vmatpush3.msra.mxu1 %v1587_v15  ;;  %1158 = vmatpush3.msra.mxu0 %v1573_v12 }
  0x33   :  { %1093 = vmatprep.subr.mxu1 %v1477_v0  ;;  %1159 = vmatprep.subr.mxu0 %v1477_v0 }
  0x34   :  { %1094 = vmatpush3.msra.mxu1 %v1593_v16  ;;  %1160 = vmatpush3.msra.mxu0 %v1579_v13 }
  0x35   :  { %1095 = vmatprep.subr.mxu1 %v1477_v0  ;;  %1161 = vmatprep.subr.mxu0 %v1477_v0 }
  0x36   :  { %1096 = vmatpush3.msra.mxu1 %v1598_v17  ;;  %1162 = vmatpush3.msra.mxu0 %v1587_v15 }
  0x37   :  { %1097 = vmatprep.subr.mxu1 %v1477_v0  ;;  %1163 = vmatprep.subr.mxu0 %v1477_v0 }
  0x38   :  { %1098 = vmatpush3.msra.mxu1 %v1604_v18  ;;  %1164 = vmatpush3.msra.mxu0 %v1593_v16 }
  0x39   :  { %1099 = vmatprep.subr.mxu1 %v1477_v0  ;;  %1165 = vmatprep.subr.mxu0 %v1477_v0 }
  0x3a   :  { %1100 = vmatpush3.msra.mxu1 %v1610_v19  ;;  %1166 = vmatpush3.msra.mxu0 %v1598_v17 }
  0x3b   :  { %1101 = vmatprep.subr.mxu1 %v1477_v0  ;;  %1167 = vmatprep.subr.mxu0 %v1477_v0 }
  0x3c   :  { %1102 = vmatpush3.msra.mxu1 %v1616_v20  ;;  %1168 = vmatpush3.msra.mxu0 %v1604_v18 }
  0x3d   :  { %1103 = vmatprep.subr.mxu1 %v1477_v0  ;;  %1169 = vmatprep.subr.mxu0 %v1477_v0 }
  0x3e   :  { %1104 = vmatpush3.msra.mxu1 %v1622_v21  ;;  %1170 = vmatpush3.msra.mxu0 %v1610_v19 }
  0x3f   :  { %1106 = vmatmul.mubr.f32.vlgmr.msra.gmra.mxu1 %v1477_v0  ;;  %1108 = vmatprep.subr.mxu1 %v1477_v0 }
  0x40   :  { %1109 = vmatpush3.msra.mxu1 %v1529_v2  ;;  %1140 = vmatprep.mubr.msk.f32.mxu1 %vm1478_vm0, %v1477_v0 }
  0x41   :  { %1110 = vmatprep.subr.mxu1 %v1477_v0  ;;  %1171 = vmatprep.subr.mxu0 %v1477_v0 }
  0x42   :  { %1111 = vmatpush3.msra.mxu1 %v1531_v3  ;;  %1172 = vmatpush3.msra.mxu0 %v1616_v20 }
  0x43   :  { %1112 = vmatprep.subr.mxu1 %v1477_v0  ;;  %1173 = vmatprep.subr.mxu0 %v1477_v0 }
  0x44   :  { %1113 = vmatpush3.msra.mxu1 %v1536_v4  ;;  %1174 = vmatpush3.msra.mxu0 %v1622_v21 }
  0x45   :  { %1114 = vmatprep.subr.mxu1 %v1477_v0  ;;  %1213 = vmatprep.subr.mxu0 %v1477_v0 }
  0x46   :  { %1115 = vmatpush3.msra.mxu1 %v1542_v5  ;;  %75 = vperm.xlu1 %1406, %v56_v30  }
  0x47   :  { %1116 = vmatprep.subr.mxu1 %v1477_v0 }
  0x48   :  { %1117 = vmatpush3.msra.mxu1 %v1551_v7 }
  0x49   :  { %1118 = vmatprep.subr.mxu1 %v1477_v0 }
  0x4a   :  { %1119 = vmatpush3.msra.mxu1 %v1559_v9  ;;  %80 = vperm.xlu1 %1406, %v57_v31  }
  0x4b   :  { %1120 = vmatprep.subr.mxu1 %v1477_v0 }
  0x4c   :  { %1121 = vmatpush3.msra.mxu1 %v1565_v10 }
  0x4d   :  { %1122 = vmatprep.subr.mxu1 %v1477_v0 }
  0x4e   :  { %1123 = vmatpush3.msra.mxu1 %v1573_v12  ;;  %90 = vperm.xlu1 %1406, %v59_v32  }
  0x4f   :  { %1124 = vmatprep.subr.mxu1 %v1477_v0 }
  0x50   :  { %1125 = vmatpush3.msra.mxu1 %v1579_v13 }
  0x51   :  { %1126 = vmatprep.subr.mxu1 %v1477_v0 }
  0x52   :  { %1127 = vmatpush3.msra.mxu1 %v1587_v15  ;;  %100 = vperm.xlu1 %1406, %v61_v33  }
  0x53   :  { %1128 = vmatprep.subr.mxu1 %v1477_v0 }
  0x54   :  { %1129 = vmatpush3.msra.mxu1 %v1593_v16 }
  0x55   :  { %1130 = vmatprep.subr.mxu1 %v1477_v0 }
  0x56   :  { %1131 = vmatpush3.msra.mxu1 %v1598_v17 }
  0x57   :  { %1132 = vmatprep.subr.mxu1 %v1477_v0 }
  0x58   :  { %1133 = vmatpush3.msra.mxu1 %v1604_v18 }
  0x59   :  { %1134 = vmatprep.subr.mxu1 %v1477_v0 }
  0x5a   :  { %1135 = vmatpush3.msra.mxu1 %v1610_v19 }
  0x5b   :  { %1136 = vmatprep.subr.mxu1 %v1477_v0 }
  0x5c   :  { %1137 = vmatpush3.msra.mxu1 %v1616_v20 }
  0x5d   :  { %1138 = vmatprep.subr.mxu1 %v1477_v0 }
  0x5e   :  { %1139 = vmatpush3.msra.mxu1 %v1622_v21 }
  0x5f   :  { %1178 = vmatprep.subr.mxu1 %v1477_v0 }
  0xa0   :  { %v66_v23 = vpop.permute.xlu0 %65 }
  0xa1   :  { %v109_v24 = vmul.f32 %v1675_v22, %v66_v23 }
  0xa3   :  { %v124_v26 = vadd.f32 %v1681_v25, %v109_v24 }
  0xa4   :  { %v71_v34 = vpop.permute.xlu0 %70 }
  0xa5   :  { %v110_v35 = vmul.f32 %v1675_v22, %v71_v34 }
  0xa7   :  { %v125_v36 = vadd.f32 %v1681_v25, %v110_v35 }
  0xa8   :  { %v86_v52 = vpop.permute.xlu0 %85 }
  0xa9   :  { %v113_v53 = vmul.f32 %v1675_v22, %v86_v52 }
  0xab   :  { %v128_v54 = vadd.f32 %v1681_v25, %v113_v53 }
  0xc1   :  { %v76_v40 = vpop.permute.xlu1 %75 }
  0xc2   :  { %v111_v41 = vmul.f32 %v1675_v22, %v76_v40 }
  0xc4   :  { %v126_v42 = vadd.f32 %v1681_v25, %v111_v41 }
  0xc5   :  { %v81_v46 = vpop.permute.xlu1 %80 }
  0xc6   :  { %v112_v47 = vmul.f32 %v1675_v22, %v81_v46 }
  0xc8   :  { %v127_v48 = vadd.f32 %v1681_v25, %v112_v47 }
  0xc9   :  { %v91_v59 = vpop.permute.xlu1 %90 }
  0xca   :  { %v114_v60 = vmul.f32 %v1675_v22, %v91_v59 }
  0xcc   :  { %v129_v61 = vadd.f32 %v1681_v25, %v114_v60 }
  0xcd   :  { %v101_v30 = vpop.permute.xlu1 %100 }
  0xce   :  { %v116_v31 = vmul.f32 %v1675_v22, %v101_v30 }
  0xd0   :  { %v131_v32 = vadd.f32 %v1681_v25, %v116_v31 }
  0xff   :  { %v224_v27 = vpop.f32.mrf.mxu1 }
 0x100   :  { %v1684_v28 = vadd.f32 %v224_v27, %v124_v26 }
 0x101   :  { %v1107_v29 = vpop.f32.mrf.mxu1 }
 0x102   :  { %1141 = vmatmul.mubr.f32.vlgmr.msra.gmra.mxu1 %v1684_v28 }
 0x103   :  { %1179 = vmatpush3.msra.mxu1 %v1529_v2  ;;  %1210 = vmatprep.mubr.msk.f32.mxu1 %vm1478_vm0, %v1477_v0 }
 0x104   :  { %1180 = vmatprep.subr.mxu1 %v1477_v0 }
 0x105   :  { %1181 = vmatpush3.msra.mxu1 %v1531_v3 }
 0x106   :  { %1182 = vmatprep.subr.mxu1 %v1477_v0 }
 0x107   :  { %1183 = vmatpush3.msra.mxu1 %v1536_v4 }
 0x108   :  { %1184 = vmatprep.subr.mxu1 %v1477_v0 }
 0x109   :  { %1185 = vmatpush3.msra.mxu1 %v1542_v5 }
 0x10a   :  { %1186 = vmatprep.subr.mxu1 %v1477_v0 }
 0x10b   :  { %1187 = vmatpush3.msra.mxu1 %v1551_v7 }
 0x10c   :  { %1188 = vmatprep.subr.mxu1 %v1477_v0 }
 0x10d   :  { %1189 = vmatpush3.msra.mxu1 %v1559_v9 }
 0x10e   :  { %1190 = vmatprep.subr.mxu1 %v1477_v0 }
 0x10f   :  { %1191 = vmatpush3.msra.mxu1 %v1565_v10 }
 0x110   :  { %1192 = vmatprep.subr.mxu1 %v1477_v0 }
 0x111   :  { %1193 = vmatpush3.msra.mxu1 %v1573_v12 }
 0x112   :  { %1194 = vmatprep.subr.mxu1 %v1477_v0 }
 0x113   :  { %1195 = vmatpush3.msra.mxu1 %v1579_v13 }
 0x114   :  { %1196 = vmatprep.subr.mxu1 %v1477_v0 }
 0x115   :  { %1197 = vmatpush3.msra.mxu1 %v1587_v15 }
 0x116   :  { %1198 = vmatprep.subr.mxu1 %v1477_v0 }
 0x117   :  { %1199 = vmatpush3.msra.mxu1 %v1593_v16 }
 0x118   :  { %1200 = vmatprep.subr.mxu1 %v1477_v0 }
 0x119   :  { %1201 = vmatpush3.msra.mxu1 %v1598_v17 }
 0x11a   :  { %1202 = vmatprep.subr.mxu1 %v1477_v0 }
 0x11b   :  { %1203 = vmatpush3.msra.mxu1 %v1604_v18 }
 0x11c   :  { %1204 = vmatprep.subr.mxu1 %v1477_v0 }
 0x11d   :  { %1205 = vmatpush3.msra.mxu1 %v1610_v19 }
 0x11e   :  { %1206 = vmatprep.subr.mxu1 %v1477_v0 }
 0x11f   :  { %1207 = vmatpush3.msra.mxu1 %v1616_v20 }
 0x120   :  { %1208 = vmatprep.subr.mxu1 %v1477_v0 }
 0x121   :  { %1209 = vmatpush3.msra.mxu1 %v1622_v21 }
 0x122   :  { %1248 = vmatprep.subr.mxu1 %v1477_v0 }
 0x1c2   :  { %v298_v37 = vpop.f32.mrf.mxu1 }
 0x1c3   :  { %v1735_v38 = vadd.f32 %v298_v37, %v125_v36 }
 0x1c4   :  { %v1142_v39 = vpop.f32.mrf.mxu1 }
 0x1c5   :  { %1176 = vmatmul.mubr.f32.vlgmr.msra.gmra.mxu0 %v1735_v38 }
 0x1c6   :  { %1214 = vmatpush3.msra.mxu0 %v1529_v2  ;;  %1245 = vmatprep.mubr.msk.f32.mxu0 %vm1478_vm0, %v1477_v0 }
 0x1c7   :  { %1215 = vmatprep.subr.mxu0 %v1477_v0 }
 0x1c8   :  { %1216 = vmatpush3.msra.mxu0 %v1531_v3 }
 0x1c9   :  { %1217 = vmatprep.subr.mxu0 %v1477_v0 }
 0x1ca   :  { %1218 = vmatpush3.msra.mxu0 %v1536_v4 }
 0x1cb   :  { %1219 = vmatprep.subr.mxu0 %v1477_v0 }
 0x1cc   :  { %1220 = vmatpush3.msra.mxu0 %v1542_v5 }
 0x1cd   :  { %1221 = vmatprep.subr.mxu0 %v1477_v0 }
 0x1ce   :  { %1222 = vmatpush3.msra.mxu0 %v1551_v7 }
 0x1cf   :  { %1223 = vmatprep.subr.mxu0 %v1477_v0 }
 0x1d0   :  { %1224 = vmatpush3.msra.mxu0 %v1559_v9 }
 0x1d1   :  { %1225 = vmatprep.subr.mxu0 %v1477_v0 }
 0x1d2   :  { %1226 = vmatpush3.msra.mxu0 %v1565_v10 }
 0x1d3   :  { %1227 = vmatprep.subr.mxu0 %v1477_v0 }
 0x1d4   :  { %1228 = vmatpush3.msra.mxu0 %v1573_v12 }
 0x1d5   :  { %1229 = vmatprep.subr.mxu0 %v1477_v0 }
 0x1d6   :  { %1230 = vmatpush3.msra.mxu0 %v1579_v13 }
 0x1d7   :  { %1231 = vmatprep.subr.mxu0 %v1477_v0 }
 0x1d8   :  { %1232 = vmatpush3.msra.mxu0 %v1587_v15 }
 0x1d9   :  { %1233 = vmatprep.subr.mxu0 %v1477_v0 }
 0x1da   :  { %1234 = vmatpush3.msra.mxu0 %v1593_v16 }
 0x1db   :  { %1235 = vmatprep.subr.mxu0 %v1477_v0 }
 0x1dc   :  { %1236 = vmatpush3.msra.mxu0 %v1598_v17 }
 0x1dd   :  { %1237 = vmatprep.subr.mxu0 %v1477_v0 }
 0x1de   :  { %1238 = vmatpush3.msra.mxu0 %v1604_v18 }
 0x1df   :  { %1239 = vmatprep.subr.mxu0 %v1477_v0 }
 0x1e0   :  { %1240 = vmatpush3.msra.mxu0 %v1610_v19 }
 0x1e1   :  { %1241 = vmatprep.subr.mxu0 %v1477_v0 }
 0x1e2   :  { %1242 = vmatpush3.msra.mxu0 %v1616_v20 }
 0x1e3   :  { %1243 = vmatprep.subr.mxu0 %v1477_v0 }
 0x1e4   :  { %1244 = vmatpush3.msra.mxu0 %v1622_v21 }
 0x1e5   :  { %1283 = vmatprep.subr.mxu0 %v1477_v0 }
 0x285   :  { %v373_v43 = vpop.f32.mrf.mxu0 }
 0x286   :  { %v1774_v44 = vadd.f32 %v373_v43, %v126_v42 }
 0x287   :  { %v1177_v45 = vpop.f32.mrf.mxu0 }
 0x288   :  { %1211 = vmatmul.mubr.f32.vlgmr.msra.gmra.mxu1 %v1774_v44 }
 0x289   :  { %1249 = vmatpush3.msra.mxu1 %v1529_v2  ;;  %1280 = vmatprep.mubr.msk.f32.mxu1 %vm1478_vm0, %v1477_v0 }
 0x28a   :  { %1250 = vmatprep.subr.mxu1 %v1477_v0 }
 0x28b   :  { %1251 = vmatpush3.msra.mxu1 %v1531_v3 }
 0x28c   :  { %1252 = vmatprep.subr.mxu1 %v1477_v0 }
 0x28d   :  { %1253 = vmatpush3.msra.mxu1 %v1536_v4 }
 0x28e   :  { %1254 = vmatprep.subr.mxu1 %v1477_v0 }
 0x28f   :  { %1255 = vmatpush3.msra.mxu1 %v1542_v5 }
 0x290   :  { %1256 = vmatprep.subr.mxu1 %v1477_v0 }
 0x291   :  { %1257 = vmatpush3.msra.mxu1 %v1551_v7 }
 0x292   :  { %1258 = vmatprep.subr.mxu1 %v1477_v0 }
 0x293   :  { %1259 = vmatpush3.msra.mxu1 %v1559_v9 }
 0x294   :  { %1260 = vmatprep.subr.mxu1 %v1477_v0 }
 0x295   :  { %1261 = vmatpush3.msra.mxu1 %v1565_v10 }
 0x296   :  { %1262 = vmatprep.subr.mxu1 %v1477_v0 }
 0x297   :  { %1263 = vmatpush3.msra.mxu1 %v1573_v12 }
 0x298   :  { %1264 = vmatprep.subr.mxu1 %v1477_v0 }
 0x299   :  { %1265 = vmatpush3.msra.mxu1 %v1579_v13 }
 0x29a   :  { %1266 = vmatprep.subr.mxu1 %v1477_v0 }
 0x29b   :  { %1267 = vmatpush3.msra.mxu1 %v1587_v15 }
 0x29c   :  { %1268 = vmatprep.subr.mxu1 %v1477_v0 }
 0x29d   :  { %1269 = vmatpush3.msra.mxu1 %v1593_v16 }
 0x29e   :  { %1270 = vmatprep.subr.mxu1 %v1477_v0 }
 0x29f   :  { %1271 = vmatpush3.msra.mxu1 %v1598_v17 }
 0x2a0   :  { %1272 = vmatprep.subr.mxu1 %v1477_v0 }
 0x2a1   :  { %1273 = vmatpush3.msra.mxu1 %v1604_v18 }
 0x2a2   :  { %1274 = vmatprep.subr.mxu1 %v1477_v0 }
 0x2a3   :  { %1275 = vmatpush3.msra.mxu1 %v1610_v19 }
 0x2a4   :  { %1276 = vmatprep.subr.mxu1 %v1477_v0 }
 0x2a5   :  { %1277 = vmatpush3.msra.mxu1 %v1616_v20 }
 0x2a6   :  { %1278 = vmatprep.subr.mxu1 %v1477_v0 }
 0x2a7   :  { %1279 = vmatpush3.msra.mxu1 %v1622_v21 }
 0x2a8   :  { %1318 = vmatprep.subr.mxu1 %v1477_v0 }
 0x348   :  { %v448_v49 = vpop.f32.mrf.mxu1 }
 0x349   :  { %v1813_v50 = vadd.f32 %v448_v49, %v127_v48 }
 0x34a   :  { %v1212_v51 = vpop.f32.mrf.mxu1 }
 0x34b   :  { %1246 = vmatmul.mubr.f32.vlgmr.msra.gmra.mxu0 %v1813_v50 }
 0x34c   :  { %1284 = vmatpush3.msra.mxu0 %v1529_v2  ;;  %1315 = vmatprep.mubr.msk.f32.mxu0 %vm1478_vm0, %v1477_v0 }
 0x34d   :  { %1285 = vmatprep.subr.mxu0 %v1477_v0 }
 0x34e   :  { %1286 = vmatpush3.msra.mxu0 %v1531_v3 }
 0x34f   :  { %1287 = vmatprep.subr.mxu0 %v1477_v0 }
 0x350   :  { %1288 = vmatpush3.msra.mxu0 %v1536_v4 }
 0x351   :  { %1289 = vmatprep.subr.mxu0 %v1477_v0 }
 0x352   :  { %1290 = vmatpush3.msra.mxu0 %v1542_v5 }
 0x353   :  { %1291 = vmatprep.subr.mxu0 %v1477_v0 }
 0x354   :  { %1292 = vmatpush3.msra.mxu0 %v1551_v7 }
 0x355   :  { %1293 = vmatprep.subr.mxu0 %v1477_v0 }
 0x356   :  { %1294 = vmatpush3.msra.mxu0 %v1559_v9 }
 0x357   :  { %1295 = vmatprep.subr.mxu0 %v1477_v0 }
 0x358   :  { %1296 = vmatpush3.msra.mxu0 %v1565_v10 }
 0x359   :  { %1297 = vmatprep.subr.mxu0 %v1477_v0 }
 0x35a   :  { %1298 = vmatpush3.msra.mxu0 %v1573_v12 }
 0x35b   :  { %1299 = vmatprep.subr.mxu0 %v1477_v0 }
 0x35c   :  { %1300 = vmatpush3.msra.mxu0 %v1579_v13 }
 0x35d   :  { %1301 = vmatprep.subr.mxu0 %v1477_v0 }
 0x35e   :  { %1302 = vmatpush3.msra.mxu0 %v1587_v15 }
 0x35f   :  { %1303 = vmatprep.subr.mxu0 %v1477_v0 }
 0x360   :  { %1304 = vmatpush3.msra.mxu0 %v1593_v16 }
 0x361   :  { %1305 = vmatprep.subr.mxu0 %v1477_v0 }
 0x362   :  { %1306 = vmatpush3.msra.mxu0 %v1598_v17 }
 0x363   :  { %1307 = vmatprep.subr.mxu0 %v1477_v0 }
 0x364   :  { %1308 = vmatpush3.msra.mxu0 %v1604_v18 }
 0x365   :  { %1309 = vmatprep.subr.mxu0 %v1477_v0 }
 0x366   :  { %1310 = vmatpush3.msra.mxu0 %v1610_v19 }
 0x367   :  { %1311 = vmatprep.subr.mxu0 %v1477_v0 }
 0x368   :  { %1312 = vmatpush3.msra.mxu0 %v1616_v20 }
 0x369   :  { %1313 = vmatprep.subr.mxu0 %v1477_v0 }
 0x36a   :  { %1314 = vmatpush3.msra.mxu0 %v1622_v21 }
 0x36b   :  { %1353 = vmatprep.subr.mxu0 %v779_v58 }
 0x40b   :  { %v523_v55 = vpop.f32.mrf.mxu0 }
 0x40c   :  { %v1851_v56 = vadd.f32 %v523_v55, %v128_v54 }
 0x40d   :  { %v1247_v57 = vpop.f32.mrf.mxu0 }
 0x40e   :  { %1281 = vmatmul.mubr.f32.vlgmr.msra.gmra.mxu1 %v1851_v56 }
 0x40f   :  { %1319 = vmatpush3.msra.mxu1 %v1529_v2  ;;  %1350 = vmatprep.mubr.msk.f32.mxu1 %vm1478_vm0, %v1477_v0  ;;  %v778_v2 = vld [vmem:[#allocation8 + $0x70] sm:$0xff] }
 0x410   :  { %1320 = vmatprep.subr.mxu1 %v1477_v0 }
 0x411   :  { %1321 = vmatpush3.msra.mxu1 %v1531_v3  ;;  %v777_v3 = vld [vmem:[#allocation8 + $0x68] sm:$0xff] }
 0x412   :  { %1322 = vmatprep.subr.mxu1 %v1477_v0 }
 0x413   :  { %1323 = vmatpush3.msra.mxu1 %v1536_v4  ;;  %v775_v4 = vld [vmem:[#allocation8 + $0x58] sm:$0xff] }
 0x414   :  { %1324 = vmatprep.subr.mxu1 %v1477_v0 }
 0x415   :  { %1325 = vmatpush3.msra.mxu1 %v1542_v5  ;;  %v774_v5 = vld [vmem:[#allocation8 + $0x50] sm:$0xff] }
 0x416   :  { %1326 = vmatprep.subr.mxu1 %v1477_v0 }
 0x417   :  { %1327 = vmatpush3.msra.mxu1 %v1551_v7  ;;  %v772_v7 = vld [vmem:[#allocation8 + $0x40] sm:$0xff] }
 0x418   :  { %1328 = vmatprep.subr.mxu1 %v1477_v0 }
 0x419   :  { %1329 = vmatpush3.msra.mxu1 %v1559_v9  ;;  %v770_v9 = vld [vmem:[#allocation8 + $0x30] sm:$0xff] }
 0x41a   :  { %1330 = vmatprep.subr.mxu1 %v1477_v0 }
 0x41b   :  { %1331 = vmatpush3.msra.mxu1 %v1565_v10  ;;  %v769_v10 = vld [vmem:[#allocation8 + $0x28] sm:$0xff] }
 0x41c   :  { %1332 = vmatprep.subr.mxu1 %v1477_v0 }
 0x41d   :  { %1333 = vmatpush3.msra.mxu1 %v1573_v12  ;;  %v767_v12 = vld [vmem:[#allocation8 + $0x18] sm:$0xff] }
 0x41e   :  { %1334 = vmatprep.subr.mxu1 %v1477_v0 }
 0x41f   :  { %1335 = vmatpush3.msra.mxu1 %v1579_v13  ;;  %v766_v13 = vld [vmem:[#allocation8 + $0x10] sm:$0xff] }
 0x420   :  { %1336 = vmatprep.subr.mxu1 %v1477_v0 }
 0x421   :  { %1337 = vmatpush3.msra.mxu1 %v1587_v15  ;;  %v764_v15 = vld [vmem:[#allocation8] sm:$0xff] }
 0x422   :  { %1338 = vmatprep.subr.mxu1 %v1477_v0 }
 0x423   :  { %1339 = vmatpush3.msra.mxu1 %v1593_v16  ;;  %v96_v16 = vpop.permute.xlu0 %95 }
 0x424   :  { %1340 = vmatprep.subr.mxu1 %v1477_v0 }
 0x425   :  { %1341 = vmatpush3.msra.mxu1 %v1598_v17  ;;  %v115_v17 = vmul.f32 %v1675_v22, %v96_v16 }
 0x426   :  { %1342 = vmatprep.subr.mxu1 %v1477_v0 }
 0x427   :  { %1343 = vmatpush3.msra.mxu1 %v1604_v18  ;;  %v130_v18 = vadd.f32 %v1681_v25, %v115_v17 }
 0x428   :  { %1344 = vmatprep.subr.mxu1 %v1477_v0 }
 0x429   :  { %1345 = vmatpush3.msra.mxu1 %v1610_v19 }
 0x42a   :  { %1346 = vmatprep.subr.mxu1 %v1477_v0 }
 0x42b   :  { %1347 = vmatpush3.msra.mxu1 %v1616_v20 }
 0x42c   :  { %1348 = vmatprep.subr.mxu1 %v1477_v0  ;;  %v776_v0 = vld [vmem:[#allocation8 + $0x60] sm:$0xff] }
 0x42d   :  { %1349 = vmatpush3.msra.mxu1 %v1622_v21 }
 0x4ce   :  { %v598_v62 = vpop.f32.mrf.mxu1 }
 0x4cf   :  { %v602_v63 = vadd.f32 %v598_v62, %v129_v61 }
 0x4d0   :  { %v1282_v1 = vpop.f32.mrf.mxu1 }
 0x4d1   :  { %1316 = vmatmul.mubr.f32.vlgmr.msra.gmra.mxu0 %v602_v63 }
 0x4d2   :  { %1354 = vmatpush3.msra.mxu0 %v779_v58  ;;  %1385 = vmatprep.mubr.f32.mxu0 %v1684_v28 }
 0x4d3   :  { %1355 = vmatprep.subr.mxu0 %v778_v2 }
 0x4d4   :  { %1356 = vmatpush3.msra.mxu0 %v778_v2 }
 0x4d5   :  { %1357 = vmatprep.subr.mxu0 %v777_v3 }
 0x4d6   :  { %1358 = vmatpush3.msra.mxu0 %v777_v3 }
 0x4d7   :  { %1359 = vmatprep.subr.mxu0 %v776_v0 }
 0x4d8   :  { %1360 = vmatpush3.msra.mxu0 %v776_v0 }
 0x4d9   :  { %1361 = vmatprep.subr.mxu0 %v775_v4 }
 0x4da   :  { %1362 = vmatpush3.msra.mxu0 %v775_v4 }
 0x4db   :  { %1363 = vmatprep.subr.mxu0 %v774_v5 }
 0x4dc   :  { %1364 = vmatpush3.msra.mxu0 %v774_v5 }
 0x4dd   :  { %1365 = vmatprep.subr.mxu0 %v773_v6 }
 0x4de   :  { %1366 = vmatpush3.msra.mxu0 %v773_v6 }
 0x4df   :  { %1367 = vmatprep.subr.mxu0 %v772_v7 }
 0x4e0   :  { %1368 = vmatpush3.msra.mxu0 %v772_v7 }
 0x4e1   :  { %1369 = vmatprep.subr.mxu0 %v771_v8 }
 0x4e2   :  { %1370 = vmatpush3.msra.mxu0 %v771_v8 }
 0x4e3   :  { %1371 = vmatprep.subr.mxu0 %v770_v9 }
 0x4e4   :  { %1372 = vmatpush3.msra.mxu0 %v770_v9 }
 0x4e5   :  { %1373 = vmatprep.subr.mxu0 %v769_v10 }
 0x4e6   :  { %1374 = vmatpush3.msra.mxu0 %v769_v10 }
 0x4e7   :  { %1375 = vmatprep.subr.mxu0 %v768_v11 }
 0x4e8   :  { %1376 = vmatpush3.msra.mxu0 %v768_v11 }
 0x4e9   :  { %1377 = vmatprep.subr.mxu0 %v767_v12 }
 0x4ea   :  { %1378 = vmatpush3.msra.mxu0 %v767_v12 }
 0x4eb   :  { %1379 = vmatprep.subr.mxu0 %v766_v13 }
 0x4ec   :  { %1380 = vmatpush3.msra.mxu0 %v766_v13 }
 0x4ed   :  { %1381 = vmatprep.subr.mxu0 %v765_v14 }
 0x4ee   :  { %1382 = vmatpush3.msra.mxu0 %v765_v14 }
 0x4ef   :  { %1383 = vmatprep.subr.mxu0 %v764_v15 }
 0x4f0   :  { %1384 = vmatpush3.msra.mxu0 %v764_v15 }
 0x4f1   :  { %1386 = vmatmul.mubr.f32.vlgmr.msra.gmra.mxu0 %v1735_v38 }
 0x4f2   :  { %1388 = vmatprep.mubr.f32.mxu0 %v1774_v44 }
 0x4f5   :  { %1389 = vmatmul.mubr.f32.gmra.mxu0 %v1813_v50 }
 0x4f6   :  { %1391 = vmatprep.mubr.f32.mxu0 %v1851_v56 }
 0x4f9   :  { %1392 = vmatmul.mubr.f32.gmra.mxu0 %v602_v63 }
 0x591   :  { %v673_v19 = vpop.f32.mrf.mxu0 }
 0x592   :  { %v677_v20 = vadd.f32 %v673_v19, %v130_v18 }
 0x593   :  { %v1317_v21 = vpop.f32.mrf.mxu0 }
 0x594   :  { %1351 = vmatmul.mubr.f32.vlgmr.msra.gmra.mxu1 %v677_v20  ;;  %1394 = vmatprep.mubr.f32.mxu0 %v677_v20 }
 0x5b1   :  { %v1387_v23 = vpop.f32.mrf.mxu0 }
 0x5b2   :  { %886 = vst [vmem:[#allocation10 + $0x8] sm:$0xff] %v1387_v23 }
 0x5b3   :  { %v846_v24 = vpop.f32.mrf.mxu0 }
 0x5b4   :  { %885 = vst [vmem:[#allocation10] sm:$0xff] %v846_v24 }
 0x5b5   :  { %v1390_v26 = vpop.f32.mrf.mxu0 }
 0x5b6   :  { %888 = vst [vmem:[#allocation10 + $0x18] sm:$0xff] %v1390_v26 }
 0x5b7   :  { %v856_v27 = vpop.f32.mrf.mxu0 }
 0x5b8   :  { %887 = vst [vmem:[#allocation10 + $0x10] sm:$0xff] %v856_v27 }
 0x5b9   :  { %v1393_v28 = vpop.f32.mrf.mxu0 }
 0x5ba   :  { %890 = vst [vmem:[#allocation10 + $0x28] sm:$0xff] %v1393_v28 }
 0x5bb   :  { %v866_v29 = vpop.f32.mrf.mxu0 }
 0x5bc   :  { %889 = vst [vmem:[#allocation10 + $0x20] sm:$0xff] %v866_v29 }
 0x654   :  { %v748_v33 = vpop.f32.mrf.mxu1 }
 0x655   :  { %v752_v34 = vadd.f32 %v748_v33, %v131_v32 }
 0x656   :  { %v1352_v35 = vpop.f32.mrf.mxu1 }
 0x657   :  { %1395 = vmatmul.mubr.f32.gmra.mxu0 %v752_v34 }
 0x717   :  { %v1396_v36 = vpop.f32.mrf.mxu0 }
 0x718   :  { %892 = vst [vmem:[#allocation10 + $0x38] sm:$0xff] %v1396_v36 }
 0x719   :  { %v876_v37 = vpop.f32.mrf.mxu0 }
 0x71a   :  { %891 = vst [vmem:[#allocation10 + $0x30] sm:$0xff] %v876_v37 }
 0x71b   :  { %1458 = shalt.err (!%p1455_p0)
}
 0x71c   :  { %904 = dma.vmem_to_hbm [thread:$0]  %s899_s23, 1024, %s1909_s5, [#allocation7], %s1474_s21, %s1474_s21, %s1475_s22  }
 0x71d   :  { %1471 = dma.done.wait [#allocation7], 1024  }
 0x71e   :  { %1472 = vsyncadd [#allocation7], 4294966272 }
 0x71f   :  { %908 = vsyncpa [#allocation6], 1 }
 0x720   :  { %909 = vsyncpa [#allocation9], 1 }
 0x721   :  { %910 = vsyncpa [#allocation7], 1 }

</bundles_post_ra>
